<compile_context>
chip_gen: v6e
topology: v6e:2x2x1
jax: 0.10.0
libtpu: 0.0.40
codegen_flags: <defaults>
</compile_context>

<pallas_src>
import jax
import jax.numpy as jnp
from jax.experimental import pallas as pl
from jax.experimental.pallas import tpu as pltpu

# TODO(synk): non-array entries of *args have no Pallas representation; they
# are passed through unchanged at the Python level (exactly what OutputModule
# does).

# 2 MiB per buffer: safe under v5e's 16 MiB scoped-VMEM default even with
# double-buffered input + output, and already near the HBM roofline on v6e/v7x.
_TARGET_BLOCK_BYTES = 2 * 1024 * 1024


def _copy_kernel(x_ref, o_ref):
    # OutputModule.forward applies no computation: pure pass-through copy.
    o_ref[...] = x_ref[...]


def _materialized_copy(x: jax.Array, *, donate: bool = False) -> jax.Array:
    """Identity copy of one array via a Pallas TPU kernel (fresh buffer)."""
    if x.ndim == 0 or x.size == 0:
        return x

    orig_shape = x.shape
    if x.ndim == 1:
        rows, cols = 1, x.shape[0]
    else:
        cols = x.shape[-1]
        rows = x.size // cols
    # Collapsing leading dims of a contiguous row-major array is a bitcast —
    # no extra HBM traffic (unlike the previous pad/flatten/slice path).
    x2d = x.reshape(rows, cols)

    itemsize = jnp.dtype(x.dtype).itemsize
    row_bytes = max(cols * itemsize, 1)
    # Row-block cap: multiple of 8, ~2 MiB per buffer.
    cap = max(8, (_TARGET_BLOCK_BYTES // row_bytes) // 8 * 8)
    # Full extent (always legal) for small inputs; otherwise a multiple of 8
    # with the tail block masked automatically by the pl.cdiv grid.
    block_rows = rows if rows <= cap else cap

    grid = (pl.cdiv(rows, block_rows),)
    nbytes = x.size * itemsize

    out2d = pl.pallas_call(
        _copy_kernel,
        out_shape=jax.ShapeDtypeStruct((rows, cols), x.dtype),
        grid=grid,
        in_specs=[pl.BlockSpec((block_rows, cols), lambda i: (i, 0))],
        out_specs=pl.BlockSpec((block_rows, cols), lambda i: (i, 0)),
        compiler_params=pltpu.CompilerParams(
            dimension_semantics=("parallel",),
        ),
        cost_estimate=pl.CostEstimate(
            flops=0, transcendentals=0, bytes_accessed=2 * nbytes
        ),
        # Alias output onto the input buffer when the caller donates it:
        # halves peak HBM footprint for large arrays.
        input_output_aliases=({0: 0} if donate else {}),
    )(x2d)
    return out2d.reshape(orig_shape)


def output_module_forward(*args):
    """Exact Pallas-level equivalent of OutputModule.forward(*args) -> args.

    The module performs no computation, so the optimal implementation on every
    TPU generation is to return the inputs untouched (no kernel, no HBM
    round-trip, no launch overhead).
    """
    return tuple(args)


def output_module_forward_materialized(*args, donate: bool = False):
    """Variant that materializes each array arg into a fresh buffer via a
    Pallas identity-copy kernel (bit-identical, dtype-preserving)."""
    # TODO(synk): if many array args must be copied, fuse them into a single
    # pallas_call (multiple in/out refs) to amortize launch overhead.
    return tuple(
        _materialized_copy(a, donate=donate) if isinstance(a, jax.Array) else a
        for a in args
    )


if __name__ == "__main__":
    key = jax.random.PRNGKey(0)
    k1, k2 = jax.random.split(key)
    # Small inputs consistent with an arbitrary-args output module:
    # a conv-style NCHW feature map and a (batch, seq, hidden) activation.
    x = jax.random.normal(k1, (2, 4, 16, 16), dtype=jnp.float32)
    y = jax.random.normal(k2, (2, 8, 32), dtype=jnp.float32)

    # Primary (optimal) path: pure pass-through, exactly `return args`.
    outs = output_module_forward(x, y)
    assert isinstance(outs, tuple) and len(outs) == 2
    assert outs[0] is x and outs[1] is y

    # Exercise the Pallas copy kernel once (materialized variant).
    mouts = output_module_forward_materialized(x, y)
    jax.block_until_ready(mouts)
    xo, yo = mouts
    assert xo.shape == x.shape and xo.dtype == x.dtype
    assert yo.shape == y.shape and yo.dtype == y.dtype
    # OutputModule returns its args unchanged -> copies must be bit-identical.
    assert jnp.array_equal(xo, x)
    assert jnp.array_equal(yo, y)

    print("KERNEL_OK")
</pallas_src>

<mosaic_0001>
module attributes {stable_mosaic.version = 11 : i64} {
  func.func @_copy_kernel(%arg0: i32, %arg1: memref<128x16xf32, #tpu.memory_space<vmem>>, %arg2: memref<128x16xf32, #tpu.memory_space<vmem>>) attributes {dimension_semantics = [#tpu.dimension_semantics<parallel>], iteration_bounds = array<i64: 1>, scalar_prefetch = 0 : i64, scratch_operands = 0 : i64, tpu.core_type = #tpu.core_type<tc>, window_params = [{transform_indices = @transform_0, window_bounds = array<i64: 128, 16>}, {transform_indices = @transform_1, window_bounds = array<i64: 128, 16>}]} {
    %c0 = arith.constant 0 : index
    %c0_0 = arith.constant 0 : index
    %0 = vector.load %arg1[%c0, %c0_0] : memref<128x16xf32, #tpu.memory_space<vmem>>, vector<128x16xf32>
    %c0_1 = arith.constant 0 : index
    %c0_2 = arith.constant 0 : index
    %1 = vector.load %arg2[%c0_1, %c0_2] : memref<128x16xf32, #tpu.memory_space<vmem>>, vector<128x16xf32>
    tpu.vector_store %arg2[%c0_1, %c0_2], %0 {strides = array<i32>} : memref<128x16xf32, #tpu.memory_space<vmem>>, vector<128x16xf32>,
    return
  }
  func.func @transform_0(%arg0: i32) -> (i32, i32) {
    %c0_i32 = arith.constant 0 : i32
    %c0_i32_0 = arith.constant 0 : i32
    return %arg0, %c0_i32 : i32, i32
  }
  func.func @transform_1(%arg0: i32) -> (i32, i32) {
    %c0_i32 = arith.constant 0 : i32
    %c0_i32_0 = arith.constant 0 : i32
    return %arg0, %c0_i32 : i32, i32
  }
}

</mosaic_0001>

<bundles_post_ra>
// kernel: tpu_custom_call.1
= control target key start
LH: loop header
LB: loop body
LE: loop exit
PB: predicated region body
PF: predicated region fallthrough
CT: control target
= control target key end

     0   :  { %vm24_vm0 = vcmask 130048   ;;  %s167_s0 = inlined_call_operand.vmem [shape: f32[128,16], index: 0, kind: input, shape index: {}]   ;;  %s168_s1 = inlined_call_operand.vmem [shape: f32[128,16], index: 1, kind: output, shape index: {}]  }
   0x1   :  { %v8_v0 = vld [vmem:[%s167_s0] sm:$0xff]  ;;  %v9_v1 = vld [vmem:[%s167_s0 + $0x8] sm:$0xff]  ;;  %v10_v2 = vld [vmem:[%s167_s0 + $0x10] sm:$0xff] }
   0x2   :  { %25 = vst.msk [vmem:[%s168_s1] sm:$0xff] %vm24_vm0, %v8_v0  ;;  %26 = vst.msk [vmem:[%s168_s1 + $0x8] sm:$0xff] %vm24_vm0, %v9_v1  ;;  %v11_v3 = vld [vmem:[%s167_s0 + $0x18] sm:$0xff]  ;;  %v12_v4 = vld [vmem:[%s167_s0 + $0x20] sm:$0xff] }
   0x3   :  { %27 = vst.msk [vmem:[%s168_s1 + $0x10] sm:$0xff] %vm24_vm0, %v10_v2  ;;  %v13_v5 = vld [vmem:[%s167_s0 + $0x28] sm:$0xff]  ;;  %28 = vst.msk [vmem:[%s168_s1 + $0x18] sm:$0xff] %vm24_vm0, %v11_v3  ;;  %v14_v6 = vld [vmem:[%s167_s0 + $0x30] sm:$0xff] }
   0x4   :  { %29 = vst.msk [vmem:[%s168_s1 + $0x20] sm:$0xff] %vm24_vm0, %v12_v4  ;;  %30 = vst.msk [vmem:[%s168_s1 + $0x28] sm:$0xff] %vm24_vm0, %v13_v5  ;;  %v15_v7 = vld [vmem:[%s167_s0 + $0x38] sm:$0xff]  ;;  %v16_v8 = vld [vmem:[%s167_s0 + $0x40] sm:$0xff] }
   0x5   :  { %31 = vst.msk [vmem:[%s168_s1 + $0x30] sm:$0xff] %vm24_vm0, %v14_v6  ;;  %32 = vst.msk [vmem:[%s168_s1 + $0x38] sm:$0xff] %vm24_vm0, %v15_v7  ;;  %v17_v9 = vld [vmem:[%s167_s0 + $0x48] sm:$0xff]  ;;  %v18_v10 = vld [vmem:[%s167_s0 + $0x50] sm:$0xff] }
   0x6   :  { %33 = vst.msk [vmem:[%s168_s1 + $0x40] sm:$0xff] %vm24_vm0, %v16_v8  ;;  %v19_v11 = vld [vmem:[%s167_s0 + $0x58] sm:$0xff]  ;;  %34 = vst.msk [vmem:[%s168_s1 + $0x48] sm:$0xff] %vm24_vm0, %v17_v9  ;;  %v20_v12 = vld [vmem:[%s167_s0 + $0x60] sm:$0xff] }
   0x7   :  { %35 = vst.msk [vmem:[%s168_s1 + $0x50] sm:$0xff] %vm24_vm0, %v18_v10  ;;  %36 = vst.msk [vmem:[%s168_s1 + $0x58] sm:$0xff] %vm24_vm0, %v19_v11  ;;  %v21_v13 = vld [vmem:[%s167_s0 + $0x68] sm:$0xff]  ;;  %v22_v14 = vld [vmem:[%s167_s0 + $0x70] sm:$0xff] }
   0x8   :  { %37 = vst.msk [vmem:[%s168_s1 + $0x60] sm:$0xff] %vm24_vm0, %v20_v12  ;;  %38 = vst.msk [vmem:[%s168_s1 + $0x68] sm:$0xff] %vm24_vm0, %v21_v13  ;;  %v23_v15 = vld [vmem:[%s167_s0 + $0x78] sm:$0xff] }
   0x9   :  { %39 = vst.msk [vmem:[%s168_s1 + $0x70] sm:$0xff] %vm24_vm0, %v22_v14  ;;  %40 = vst.msk [vmem:[%s168_s1 + $0x78] sm:$0xff] %vm24_vm0, %v23_v15 }

</bundles_post_ra>
